<compile_context>
chip_gen: v7x
topology: tpu7x:2x2x1
jax: 0.10.0
libtpu: 0.0.40
codegen_flags: <defaults>
</compile_context>

<pallas_src>
import functools

import jax
import jax.numpy as jnp
from jax.experimental import pallas as pl
from jax.experimental.pallas import tpu as pltpu

NUM_CLASSES = 10
CONV_CH = 8          # CNN stand-in: conv output channels
EMBED_DIM = 32       # ViT stand-in: patch embedding dim
PATCH = 4            # ViT stand-in: patch size

_VMEM = pl.BlockSpec(memory_space=pltpu.MemorySpace.VMEM)


# ----------------------------------------------------------------------------
# Single fused Pallas kernel: whole arrays resident in VMEM (shapes are small)
# ----------------------------------------------------------------------------
def _fused_kernel(cols_ref, patches_ref,
                  wc_ref, bc_ref, wh_cnn_ref, bh_cnn_ref,
                  we_ref, be_ref, wh_vit_ref, bh_vit_ref,
                  wfc_cnn_ref, wfc_vit_ref, bfc_ref,
                  out_ref, *, batch, hw, num_patches):
    # ---- cnn_features = cnn_model(mfcc) ----
    # TODO(synk): actual cnn_model architecture is not specified in the module;
    # stand-in: 3x3 conv (as im2col matmul) -> ReLU -> global-avg-pool -> linear.
    conv = jnp.dot(cols_ref[...], wc_ref[...],
                   preferred_element_type=jnp.float32) + bc_ref[...]
    conv = jnp.maximum(conv, 0.0)                                 # (B*HW, CONV_CH)
    # Global average pool as an in-kernel sublane-group mean (XLU); no sparse
    # kron pooling matrix, no extra input DMA, no extra MXU pass.
    cnn_pooled = jnp.mean(conv.reshape(batch, hw, CONV_CH), axis=1)   # (B, CONV_CH)
    cnn_feat = jnp.dot(cnn_pooled, wh_cnn_ref[...],
                       preferred_element_type=jnp.float32) + bh_cnn_ref[...]

    # ---- vit_features = vit_model(image) ----
    # TODO(synk): actual vit_model architecture is not specified in the module;
    # stand-in: patch embedding -> GELU -> mean-pool over patches -> linear.
    # TODO(synk): jax.nn.gelu defaults to the tanh approximation; PyTorch
    # nn.GELU default is exact erf (irrelevant for this deterministic stand-in).
    emb = jnp.dot(patches_ref[...], we_ref[...],
                  preferred_element_type=jnp.float32) + be_ref[...]
    emb = jax.nn.gelu(emb)                                        # (B*P, EMBED_DIM)
    vit_pooled = jnp.mean(emb.reshape(batch, num_patches, EMBED_DIM), axis=1)
    vit_feat = jnp.dot(vit_pooled, wh_vit_ref[...],
                       preferred_element_type=jnp.float32) + bh_vit_ref[...]

    # ---- output = fc(cat([cnn_feat, vit_feat], dim=1)) ----   (exact)
    # cat([a, b]) @ W + bias == a @ W[:C] + b @ W[C:] + bias  (W pre-split at init)
    out_ref[...] = (
        jnp.dot(cnn_feat, wfc_cnn_ref[...], preferred_element_type=jnp.float32)
        + jnp.dot(vit_feat, wfc_vit_ref[...], preferred_element_type=jnp.float32)
        + bfc_ref[...]
    )


# ----------------------------------------------------------------------------
# Plain-JAX glue: pure layout reshuffles (no heavy compute)
# ----------------------------------------------------------------------------
def im2col_3x3(x):
    # x: (B, Cin, H, W), padding=1 -> (B*H*W, Cin*9)
    B, Cin, H, W = x.shape
    xp = jnp.pad(x, ((0, 0), (0, 0), (1, 1), (1, 1)))
    cols = []
    for dh in range(3):
        for dw in range(3):
            cols.append(xp[:, :, dh:dh + H, dw:dw + W])
    cols = jnp.stack(cols, axis=-1)                    # (B, Cin, H, W, 9)
    cols = cols.transpose(0, 2, 3, 1, 4).reshape(B * H * W, Cin * 9)
    return cols


def patchify(img, p=PATCH):
    # img: (B, C, H, W) -> (B*num_patches, C*p*p)
    B, C, H, W = img.shape
    x = img.reshape(B, C, H // p, p, W // p, p)
    x = x.transpose(0, 2, 4, 1, 3, 5)
    return x.reshape(B * (H // p) * (W // p), C * p * p)


# ----------------------------------------------------------------------------
# Parameter init (deterministic) and forward
# ----------------------------------------------------------------------------
def init_params(key, cin_mfcc, cin_img):
    ks = jax.random.split(key, 10)
    s = 0.05
    w_fc = s * jax.random.normal(ks[8], (2 * NUM_CLASSES, NUM_CLASSES), jnp.float32)
    p = {
        # CNN stand-in
        "wc": s * jax.random.normal(ks[0], (cin_mfcc * 9, CONV_CH), jnp.float32),
        "bc": s * jax.random.normal(ks[1], (1, CONV_CH), jnp.float32),
        "wh_cnn": s * jax.random.normal(ks[2], (CONV_CH, NUM_CLASSES), jnp.float32),
        "bh_cnn": s * jax.random.normal(ks[3], (1, NUM_CLASSES), jnp.float32),
        # ViT stand-in
        "we": s * jax.random.normal(ks[4], (cin_img * PATCH * PATCH, EMBED_DIM), jnp.float32),
        "be": s * jax.random.normal(ks[5], (1, EMBED_DIM), jnp.float32),
        "wh_vit": s * jax.random.normal(ks[6], (EMBED_DIM, NUM_CLASSES), jnp.float32),
        "bh_vit": s * jax.random.normal(ks[7], (1, NUM_CLASSES), jnp.float32),
        # CombinedModel.fc : Linear(num_classes*2, num_classes), stored (in, out).
        # Pre-split at init so the forward pass emits no slicing ops.
        "w_fc": w_fc,                      # kept only for the pure-JAX reference
        "w_fc_cnn": w_fc[:NUM_CLASSES],    # multiplies cnn features
        "w_fc_vit": w_fc[NUM_CLASSES:],    # multiplies vit features
        "b_fc": s * jax.random.normal(ks[9], (1, NUM_CLASSES), jnp.float32),
    }
    return p


@jax.jit
def combined_model_forward(params, mfcc, image):
    B, _, H, W = mfcc.shape
    Bi, _, Hi, Wi = image.shape
    hw = H * W
    num_patches = (Hi // PATCH) * (Wi // PATCH)

    cols = im2col_3x3(mfcc)        # (B*H*W, Cin*9)
    patches = patchify(image)      # (B*num_patches, Cin*PATCH*PATCH)

    kernel = functools.partial(_fused_kernel, batch=B, hw=hw,
                               num_patches=num_patches)
    operands = (cols, patches,
                params["wc"], params["bc"], params["wh_cnn"], params["bh_cnn"],
                params["we"], params["be"], params["wh_vit"], params["bh_vit"],
                params["w_fc_cnn"], params["w_fc_vit"], params["b_fc"])

    return pl.pallas_call(
        kernel,
        out_shape=jax.ShapeDtypeStruct((B, NUM_CLASSES), jnp.float32),
        in_specs=[_VMEM] * len(operands),
        out_specs=_VMEM,
    )(*operands)


# ----------------------------------------------------------------------------
def _reference(params, mfcc, image):
    # pure-JAX reference of the same math, for a correctness sanity check
    B, _, H, W = mfcc.shape
    conv = jnp.maximum(im2col_3x3(mfcc) @ params["wc"] + params["bc"], 0.0)
    cnn_feat = (conv.reshape(B, H * W, CONV_CH).mean(axis=1)
                @ params["wh_cnn"] + params["bh_cnn"])
    Bi, _, Hi, Wi = image.shape
    P = (Hi // PATCH) * (Wi // PATCH)
    emb = jax.nn.gelu(patchify(image) @ params["we"] + params["be"])
    vit_feat = (emb.reshape(Bi, P, EMBED_DIM).mean(axis=1)
                @ params["wh_vit"] + params["bh_vit"])
    combined = jnp.concatenate([cnn_feat, vit_feat], axis=1)
    return combined @ params["w_fc"] + params["b_fc"]


if __name__ == "__main__":
    key = jax.random.PRNGKey(0)
    k_mfcc, k_img, k_param = jax.random.split(key, 3)

    batch = 2
    mfcc = jax.random.normal(k_mfcc, (batch, 1, 16, 16), jnp.float32)   # (B,1,16,16)
    image = jax.random.normal(k_img, (batch, 3, 16, 16), jnp.float32)   # (B,3,16,16)

    params = init_params(k_param, cin_mfcc=1, cin_img=3)

    out = combined_model_forward(params, mfcc, image)
    out = jax.block_until_ready(out)

    ref = _reference(params, mfcc, image)
    assert out.shape == (batch, NUM_CLASSES)
    assert jnp.allclose(out, ref, atol=1e-4, rtol=1e-4)

    print("KERNEL_OK")
</pallas_src>

<mosaic_0001>
module attributes {stable_mosaic.version = 11 : i64} {
  func.func @_fused_kernel(%arg0: memref<512x9xf32, #tpu.memory_space<vmem>>, %arg1: memref<32x48xf32, #tpu.memory_space<vmem>>, %arg2: memref<9x8xf32, #tpu.memory_space<vmem>>, %arg3: memref<1x8xf32, #tpu.memory_space<vmem>>, %arg4: memref<8x10xf32, #tpu.memory_space<vmem>>, %arg5: memref<1x10xf32, #tpu.memory_space<vmem>>, %arg6: memref<48x32xf32, #tpu.memory_space<vmem>>, %arg7: memref<1x32xf32, #tpu.memory_space<vmem>>, %arg8: memref<32x10xf32, #tpu.memory_space<vmem>>, %arg9: memref<1x10xf32, #tpu.memory_space<vmem>>, %arg10: memref<10x10xf32, #tpu.memory_space<vmem>>, %arg11: memref<10x10xf32, #tpu.memory_space<vmem>>, %arg12: memref<1x10xf32, #tpu.memory_space<vmem>>, %arg13: memref<2x10xf32, #tpu.memory_space<vmem>>) attributes {dimension_semantics = [], scalar_prefetch = 0 : i64, scratch_operands = 0 : i64, tpu.core_type = #tpu.core_type<tc>} {
    %c0 = arith.constant 0 : index
    %c0_0 = arith.constant 0 : index
    %0 = vector.load %arg0[%c0, %c0_0] : memref<512x9xf32, #tpu.memory_space<vmem>>, vector<512x9xf32>
    %c0_1 = arith.constant 0 : index
    %c0_2 = arith.constant 0 : index
    %1 = vector.load %arg2[%c0_1, %c0_2] : memref<9x8xf32, #tpu.memory_space<vmem>>, vector<9x8xf32>
    %cst = arith.constant dense<0.000000e+00> : vector<512x8xf32>
    %2 = tpu.matmul %0, %1, %cst {dimension_numbers = #tpu.dot_dimension_numbers<[1], [0], [0], [1], [0, 0, 1, 1], [], []>} : vector<512x9xf32>, vector<9x8xf32>, vector<512x8xf32> -> vector<512x8xf32>
    %c0_3 = arith.constant 0 : index
    %c0_4 = arith.constant 0 : index
    %3 = vector.load %arg3[%c0_3, %c0_4] : memref<1x8xf32, #tpu.memory_space<vmem>>, vector<1x8xf32>
    %4 = vector.broadcast %3 : vector<1x8xf32> to vector<512x8xf32>
    %5 = arith.addf %2, %4 : vector<512x8xf32>
    %cst_5 = arith.constant 0.000000e+00 : f32
    %6 = vector.broadcast %cst_5 : f32 to vector<512x8xf32>
    %7 = arith.maximumf %5, %6 : vector<512x8xf32>
    %8 = vector.shape_cast %7 : vector<512x8xf32> to vector<2x256x8xf32>
    %cst_6 = arith.constant dense<0.000000e+00> : vector<2x8xf32>
    %9 = vector.multi_reduction <add>, %8, %cst_6 [1] : vector<2x256x8xf32> to vector<2x8xf32>
    %cst_7 = arith.constant 2.560000e+02 : f32
    %10 = vector.broadcast %cst_7 : f32 to vector<2x8xf32>
    %11 = arith.divf %9, %10 : vector<2x8xf32>
    %c0_8 = arith.constant 0 : index
    %c0_9 = arith.constant 0 : index
    %12 = vector.load %arg4[%c0_8, %c0_9] : memref<8x10xf32, #tpu.memory_space<vmem>>, vector<8x10xf32>
    %cst_10 = arith.constant dense<0.000000e+00> : vector<2x10xf32>
    %13 = tpu.matmul %11, %12, %cst_10 {dimension_numbers = #tpu.dot_dimension_numbers<[1], [0], [0], [1], [0, 0, 1, 1], [], []>} : vector<2x8xf32>, vector<8x10xf32>, vector<2x10xf32> -> vector<2x10xf32>
    %c0_11 = arith.constant 0 : index
    %c0_12 = arith.constant 0 : index
    %14 = vector.load %arg5[%c0_11, %c0_12] : memref<1x10xf32, #tpu.memory_space<vmem>>, vector<1x10xf32>
    %15 = vector.broadcast %14 : vector<1x10xf32> to vector<2x10xf32>
    %16 = arith.addf %13, %15 : vector<2x10xf32>
    %c0_13 = arith.constant 0 : index
    %c0_14 = arith.constant 0 : index
    %17 = vector.load %arg1[%c0_13, %c0_14] : memref<32x48xf32, #tpu.memory_space<vmem>>, vector<32x48xf32>
    %c0_15 = arith.constant 0 : index
    %c0_16 = arith.constant 0 : index
    %18 = vector.load %arg6[%c0_15, %c0_16] : memref<48x32xf32, #tpu.memory_space<vmem>>, vector<48x32xf32>
    %cst_17 = arith.constant dense<0.000000e+00> : vector<32x32xf32>
    %19 = tpu.matmul %17, %18, %cst_17 {dimension_numbers = #tpu.dot_dimension_numbers<[1], [0], [0], [1], [0, 0, 1, 1], [], []>} : vector<32x48xf32>, vector<48x32xf32>, vector<32x32xf32> -> vector<32x32xf32>
    %c0_18 = arith.constant 0 : index
    %c0_19 = arith.constant 0 : index
    %20 = vector.load %arg7[%c0_18, %c0_19] : memref<1x32xf32, #tpu.memory_space<vmem>>, vector<1x32xf32>
    %21 = vector.broadcast %20 : vector<1x32xf32> to vector<32x32xf32>
    %22 = arith.addf %19, %21 : vector<32x32xf32>
    %23 = arith.mulf %22, %22 : vector<32x32xf32>
    %24 = arith.mulf %22, %23 : vector<32x32xf32>
    %cst_20 = arith.constant 4.471500e-02 : f32
    %25 = vector.broadcast %cst_20 : f32 to vector<32x32xf32>
    %26 = arith.mulf %25, %24 : vector<32x32xf32>
    %27 = arith.addf %22, %26 : vector<32x32xf32>
    %cst_21 = arith.constant 0.797884583 : f32
    %28 = vector.broadcast %cst_21 : f32 to vector<32x32xf32>
    %29 = arith.mulf %28, %27 : vector<32x32xf32>
    %30 = math.tanh %29 : vector<32x32xf32>
    %cst_22 = arith.constant 1.000000e+00 : f32
    %31 = vector.broadcast %cst_22 : f32 to vector<32x32xf32>
    %32 = arith.addf %31, %30 : vector<32x32xf32>
    %cst_23 = arith.constant 5.000000e-01 : f32
    %33 = vector.broadcast %cst_23 : f32 to vector<32x32xf32>
    %34 = arith.mulf %33, %32 : vector<32x32xf32>
    %35 = arith.mulf %22, %34 : vector<32x32xf32>
    %36 = vector.shape_cast %35 : vector<32x32xf32> to vector<2x16x32xf32>
    %cst_24 = arith.constant dense<0.000000e+00> : vector<2x32xf32>
    %37 = vector.multi_reduction <add>, %36, %cst_24 [1] : vector<2x16x32xf32> to vector<2x32xf32>
    %cst_25 = arith.constant 1.600000e+01 : f32
    %38 = vector.broadcast %cst_25 : f32 to vector<2x32xf32>
    %39 = arith.divf %37, %38 : vector<2x32xf32>
    %c0_26 = arith.constant 0 : index
    %c0_27 = arith.constant 0 : index
    %40 = vector.load %arg8[%c0_26, %c0_27] : memref<32x10xf32, #tpu.memory_space<vmem>>, vector<32x10xf32>
    %cst_28 = arith.constant dense<0.000000e+00> : vector<2x10xf32>
    %41 = tpu.matmul %39, %40, %cst_28 {dimension_numbers = #tpu.dot_dimension_numbers<[1], [0], [0], [1], [0, 0, 1, 1], [], []>} : vector<2x32xf32>, vector<32x10xf32>, vector<2x10xf32> -> vector<2x10xf32>
    %c0_29 = arith.constant 0 : index
    %c0_30 = arith.constant 0 : index
    %42 = vector.load %arg9[%c0_29, %c0_30] : memref<1x10xf32, #tpu.memory_space<vmem>>, vector<1x10xf32>
    %43 = vector.broadcast %42 : vector<1x10xf32> to vector<2x10xf32>
    %44 = arith.addf %41, %43 : vector<2x10xf32>
    %c0_31 = arith.constant 0 : index
    %c0_32 = arith.constant 0 : index
    %45 = vector.load %arg10[%c0_31, %c0_32] : memref<10x10xf32, #tpu.memory_space<vmem>>, vector<10x10xf32>
    %cst_33 = arith.constant dense<0.000000e+00> : vector<2x10xf32>
    %46 = tpu.matmul %16, %45, %cst_33 {dimension_numbers = #tpu.dot_dimension_numbers<[1], [0], [0], [1], [0, 0, 1, 1], [], []>} : vector<2x10xf32>, vector<10x10xf32>, vector<2x10xf32> -> vector<2x10xf32>
    %c0_34 = arith.constant 0 : index
    %c0_35 = arith.constant 0 : index
    %47 = vector.load %arg11[%c0_34, %c0_35] : memref<10x10xf32, #tpu.memory_space<vmem>>, vector<10x10xf32>
    %cst_36 = arith.constant dense<0.000000e+00> : vector<2x10xf32>
    %48 = tpu.matmul %44, %47, %cst_36 {dimension_numbers = #tpu.dot_dimension_numbers<[1], [0], [0], [1], [0, 0, 1, 1], [], []>} : vector<2x10xf32>, vector<10x10xf32>, vector<2x10xf32> -> vector<2x10xf32>
    %49 = arith.addf %46, %48 : vector<2x10xf32>
    %c0_37 = arith.constant 0 : index
    %c0_38 = arith.constant 0 : index
    %50 = vector.load %arg12[%c0_37, %c0_38] : memref<1x10xf32, #tpu.memory_space<vmem>>, vector<1x10xf32>
    %51 = vector.broadcast %50 : vector<1x10xf32> to vector<2x10xf32>
    %52 = arith.addf %49, %51 : vector<2x10xf32>
    %c0_39 = arith.constant 0 : index
    %c0_40 = arith.constant 0 : index
    %53 = vector.load %arg13[%c0_39, %c0_40] : memref<2x10xf32, #tpu.memory_space<vmem>>, vector<2x10xf32>
    tpu.vector_store %arg13[%c0_39, %c0_40], %52 {strides = array<i32>} : memref<2x10xf32, #tpu.memory_space<vmem>>, vector<2x10xf32>,
    return
  }
}

</mosaic_0001>

<bundles_post_ra>
// kernel: combined_model_forward.1
= control target key start
LH: loop header
LB: loop body
LE: loop exit
PB: predicated region body
PF: predicated region fallthrough
CT: control target
= control target key end

     0   :  { %vm311_vm0 = vcmask 1040384   ;;  %vm1819_vm1 = vmmov 1   ;;  %vm118_vm3 = vcmask 72704   ;;  %s2488_s0 = inlined_call_operand.vmem [shape: f32[512,9], index: 0, kind: input, shape index: {}]   ;;  %s2489_s1 = inlined_call_operand.vmem [shape: f32[32,48], index: 1, kind: input, shape index: {}]   ;;  %s2490_s2 = inlined_call_operand.vmem [shape: f32[9,8], index: 2, kind: input, shape index: {}]   ;;  %s2491_s3 = inlined_call_operand.vmem [shape: f32[1,8], index: 3, kind: input, shape index: {}]   ;;  %s2492_s4 = inlined_call_operand.vmem [shape: f32[8,10], index: 4, kind: input, shape index: {}]   ;;  %s2493_s5 = inlined_call_operand.vmem [shape: f32[1,10], index: 5, kind: input, shape index: {}]   ;;  %s2494_s6 = inlined_call_operand.vmem [shape: f32[48,32], index: 6, kind: input, shape index: {}]   ;;  %s2495_s7 = inlined_call_operand.vmem [shape: f32[1,32], index: 7, kind: input, shape index: {}]   ;;  %s2496_s8 = inlined_call_operand.vmem [shape: f32[32,10], index: 8, kind: input, shape index: {}]   ;;  %s2497_s9 = inlined_call_operand.vmem [shape: f32[1,10], index: 9, kind: input, shape index: {}]   ;;  %s2498_s10 = inlined_call_operand.vmem [shape: f32[10,10], index: 10, kind: input, shape index: {}]   ;;  %s2499_s11 = inlined_call_operand.vmem [shape: f32[10,10], index: 11, kind: input, shape index: {}]   ;;  %s2500_s12 = inlined_call_operand.vmem [shape: f32[1,10], index: 12, kind: input, shape index: {}]   ;;  %s2501_s13 = inlined_call_operand.hbm [shape: f32[2,10], index: 13, kind: output, shape index: {}]  }
   0x1   :  { %v109_v0 = vld [vmem:[%s2490_s2] sm:$0xff]  ;;  %v110_v1 = vld [vmem:[%s2490_s2 + $0x8] sm:$0x1]  ;;  %vm1749_vm2 = vmpackc.low %vm311_vm0, %vm1819_vm1 }
   0x2   :  { %v1748_v2 = vpack.c.bf16 %v110_v1, %v109_v0  ;;  %v45_v3 = vld [vmem:[%s2488_s0] sm:$0xff]  ;;  %v46_v4 = vld [vmem:[%s2488_s0 + $0x8] sm:$0xff]  ;;  %v47_v5 = vld [vmem:[%s2488_s0 + $0x10] sm:$0xff] }
   0x3   :  { %1604 = vmatprep.mubr.msk.f32.mxu0 %vm118_vm3, %v45_v3  ;;  %v48_v6 = vld [vmem:[%s2488_s0 + $0x18] sm:$0xff]  ;;  %v49_v7 = vld [vmem:[%s2488_s0 + $0x20] sm:$0xff]  ;;  %v50_v8 = vld [vmem:[%s2488_s0 + $0x28] sm:$0xff] }
   0x4   :  { %1750 = vmatprep.subr.msk.bf16.mxu0 %vm1749_vm2, %v1748_v2  ;;  %1780 = vmatprep.subr.msk.bf16.mxu1 %vm1749_vm2, %v1748_v2  ;;  %v51_v9 = vld [vmem:[%s2488_s0 + $0x30] sm:$0xff]  ;;  %v85_v10 = vld [vmem:[%s2488_s0 + $0x140] sm:$0xff]  ;;  %v86_v11 = vld [vmem:[%s2488_s0 + $0x148] sm:$0xff] }
   0x5   :  { %1753 = vmatpush3.bf16.msk.msra.mxu0 %vm1749_vm2, %v1748_v2  ;;  %1781 = vmatpush3.bf16.msk.msra.mxu1 %vm1749_vm2, %v1748_v2  ;;  %v87_v12 = vld [vmem:[%s2488_s0 + $0x150] sm:$0xff]  ;;  %v52_v13 = vld [vmem:[%s2488_s0 + $0x38] sm:$0xff]  ;;  %v53_v14 = vld [vmem:[%s2488_s0 + $0x40] sm:$0xff] }
   0x6   :  { %1664 = vmatprep.mubr.msk.f32.mxu1 %vm118_vm3, %v85_v10  ;;  %v88_v15 = vld [vmem:[%s2488_s0 + $0x158] sm:$0xff]  ;;  %v89_v16 = vld [vmem:[%s2488_s0 + $0x160] sm:$0xff]  ;;  %v54_v17 = vld [vmem:[%s2488_s0 + $0x48] sm:$0xff] }
   0x7   :  { %v55_v18 = vld [vmem:[%s2488_s0 + $0x50] sm:$0xff]  ;;  %v90_v19 = vld [vmem:[%s2488_s0 + $0x168] sm:$0xff] }
   0x8   :  { %1605 = vmatmul.mubr.msk.f32.vlgmr.msra.gmra.mrb[0].mxu0 %vm118_vm3, %v46_v4  ;;  %1665 = vmatmul.mubr.msk.f32.vlgmr.msra.gmra.mrb[0].mxu1 %vm118_vm3, %v86_v11  ;;  %v91_v20 = vld [vmem:[%s2488_s0 + $0x170] sm:$0xff] }
   0x9   :  { %1607 = vmatprep.mubr.msk.f32.mxu0 %vm118_vm3, %v47_v5  ;;  %1667 = vmatprep.mubr.msk.f32.mxu1 %vm118_vm3, %v87_v12 }
   0xc   :  { %1608 = vmatmul.mubr.msk.f32.gmra.mrb[2].mxu0 %vm118_vm3, %v48_v6  ;;  %1668 = vmatmul.mubr.msk.f32.gmra.mrb[2].mxu1 %vm118_vm3, %v88_v15 }
   0xd   :  { %1610 = vmatprep.mubr.msk.f32.mxu0 %vm118_vm3, %v49_v7  ;;  %1670 = vmatprep.mubr.msk.f32.mxu1 %vm118_vm3, %v89_v16 }
  0x10   :  { %1611 = vmatmul.mubr.msk.f32.gmra.mrb[4].mxu0 %vm118_vm3, %v50_v8 }
  0x11   :  { %1613 = vmatprep.mubr.msk.f32.mxu0 %vm118_vm3, %v51_v9 }
  0x14   :  { %1614 = vmatmul.mubr.msk.f32.gmra.mrb[6].mxu0 %vm118_vm3, %v52_v13 }
  0x15   :  { %1616 = vmatprep.mubr.msk.f32.mxu0 %vm118_vm3, %v53_v14 }
  0x18   :  { %1617 = vmatmul.mubr.msk.f32.gmra.mrb[8].mxu0 %vm118_vm3, %v54_v17 }
  0x19   :  { %18 = vsyncpa [#allocation3], 0  ;;  %1619 = vmatprep.mubr.msk.f32.mxu0 %vm118_vm3, %v55_v18  ;;  %v56_v21 = vld [vmem:[%s2488_s0 + $0x58] sm:$0xff]  ;;  %v57_v22 = vld [vmem:[%s2488_s0 + $0x60] sm:$0xff]  ;;  %1671 = vmatmul.mubr.msk.f32.gmra.mrb[4].mxu1 %vm118_vm3, %v90_v19  ;;  %v1820_v4 = vmov 0.0   ;;  %vm764_vm4 = vcmask 64512  }
  0x1a   :  { %1673 = vmatprep.mubr.msk.f32.mxu1 %vm118_vm3, %v91_v20  ;;  %v92_v23 = vld [vmem:[%s2488_s0 + $0x178] sm:$0xff]  ;;  %v93_v24 = vld [vmem:[%s2488_s0 + $0x180] sm:$0xff]  ;;  %v58_v25 = vld [vmem:[%s2488_s0 + $0x68] sm:$0xff]  ;;  %1700 = vmatprep.subr.mxu1 %v1820_v4  ;;  %vm1821_vm5 = vmmov 0   ;;  %vm916_vm6 = vcmask 1041409   ;;  %vm1007_vm7 = vcmask 392192  }
  0x1b   :  { %v59_v26 = vld [vmem:[%s2488_s0 + $0x70] sm:$0xff]  ;;  %v94_v27 = vld [vmem:[%s2488_s0 + $0x188] sm:$0xff]  ;;  %v60_v29 = vld [vmem:[%s2488_s0 + $0x78] sm:$0xff]  ;;  %vm1141_vm8 = vcmask 261120   ;;  %vm1257_vm9 = vcmask 1041408   ;;  %vm1253_vm11 = vcmask 80896  }
  0x1c   :  { %1620 = vmatmul.mubr.msk.f32.gmra.mrb[10].mxu0 %vm118_vm3, %v56_v21  ;;  %v95_v28 = vld [vmem:[%s2488_s0 + $0x190] sm:$0xff]  ;;  %v61_v30 = vld [vmem:[%s2488_s0 + $0x80] sm:$0xff]  ;;  %v96_v31 = vld [vmem:[%s2488_s0 + $0x198] sm:$0xff]  ;;  %s1823_s30 = smov [#allocation2]   ;;  %vm1415_vm12 = vcmask 74752  }
  0x1d   :  { %1622 = vmatprep.mubr.msk.f32.mxu0 %vm118_vm3, %v57_v22  ;;  %1674 = vmatmul.mubr.msk.f32.gmra.mrb[6].mxu1 %vm118_vm3, %v92_v23  ;;  %v97_v32 = vld [vmem:[%s2488_s0 + $0x1a0] sm:$0xff]  ;;  %v62_v33 = vld [vmem:[%s2488_s0 + $0x88] sm:$0xff]  ;;  %v63_v34 = vld [vmem:[%s2488_s0 + $0x90] sm:$0xff]  ;;  %s1423_s14 = sshll.u32 %s1823_s30, 4  ;;  %s1424_s14 = int_to_ptr.vmem [resolvable:$true] %s1423_s14 }
  0x1e   :  { %1676 = vmatprep.mubr.msk.f32.mxu1 %vm118_vm3, %v93_v24  ;;  %v98_v35 = vld [vmem:[%s2488_s0 + $0x1a8] sm:$0xff]  ;;  %v99_v36 = vld [vmem:[%s2488_s0 + $0x1b0] sm:$0xff]  ;;  %v64_v37 = vld [vmem:[%s2488_s0 + $0x98] sm:$0xff]  ;;  %p1800_p1 = scmp.lt.s32.totalorder %s1424_s14, %s1424_s14 }
  0x1f   :  { %v65_v38 = vld [vmem:[%s2488_s0 + $0xa0] sm:$0xff]  ;;  %v100_v39 = vld [vmem:[%s2488_s0 + $0x1b8] sm:$0xff]  ;;  %v66_v41 = vld [vmem:[%s2488_s0 + $0xa8] sm:$0xff] }
  0x20   :  { %1623 = vmatmul.mubr.msk.f32.gmra.mrb[12].mxu0 %vm118_vm3, %v58_v25  ;;  %v101_v40 = vld [vmem:[%s2488_s0 + $0x1c0] sm:$0xff]  ;;  %v67_v42 = vld [vmem:[%s2488_s0 + $0xb0] sm:$0xff]  ;;  %v102_v43 = vld [vmem:[%s2488_s0 + $0x1c8] sm:$0xff] }
  0x21   :  { %1625 = vmatprep.mubr.msk.f32.mxu0 %vm118_vm3, %v59_v26  ;;  %1677 = vmatmul.mubr.msk.f32.gmra.mrb[8].mxu1 %vm118_vm3, %v94_v27  ;;  %v103_v44 = vld [vmem:[%s2488_s0 + $0x1d0] sm:$0xff]  ;;  %v68_v45 = vld [vmem:[%s2488_s0 + $0xb8] sm:$0xff]  ;;  %v69_v46 = vld [vmem:[%s2488_s0 + $0xc0] sm:$0xff] }
  0x22   :  { %1679 = vmatprep.mubr.msk.f32.mxu1 %vm118_vm3, %v95_v28  ;;  %v104_v47 = vld [vmem:[%s2488_s0 + $0x1d8] sm:$0xff]  ;;  %v105_v48 = vld [vmem:[%s2488_s0 + $0x1e0] sm:$0xff]  ;;  %v70_v49 = vld [vmem:[%s2488_s0 + $0xc8] sm:$0xff] }
  0x23   :  { %v71_v50 = vld [vmem:[%s2488_s0 + $0xd0] sm:$0xff]  ;;  %v106_v51 = vld [vmem:[%s2488_s0 + $0x1e8] sm:$0xff]  ;;  %v72_v53 = vld [vmem:[%s2488_s0 + $0xd8] sm:$0xff] }
  0x24   :  { %1626 = vmatmul.mubr.msk.f32.gmra.mrb[14].mxu0 %vm118_vm3, %v60_v29  ;;  %v107_v52 = vld [vmem:[%s2488_s0 + $0x1f0] sm:$0xff]  ;;  %v73_v54 = vld [vmem:[%s2488_s0 + $0xe0] sm:$0xff]  ;;  %v108_v55 = vld [vmem:[%s2488_s0 + $0x1f8] sm:$0xff] }
  0x25   :  { %1628 = vmatprep.mubr.msk.f32.mxu0 %vm118_vm3, %v61_v30  ;;  %1680 = vmatmul.mubr.msk.f32.gmra.mrb[10].mxu1 %vm118_vm3, %v96_v31  ;;  %v74_v56 = vld [vmem:[%s2488_s0 + $0xe8] sm:$0xff]  ;;  %v75_v57 = vld [vmem:[%s2488_s0 + $0xf0] sm:$0xff]  ;;  %v76_v58 = vld [vmem:[%s2488_s0 + $0xf8] sm:$0xff] }
  0x26   :  { %1682 = vmatprep.mubr.msk.f32.mxu1 %vm118_vm3, %v97_v32  ;;  %v77_v59 = vld [vmem:[%s2488_s0 + $0x100] sm:$0xff]  ;;  %v78_v60 = vld [vmem:[%s2488_s0 + $0x108] sm:$0xff]  ;;  %v79_v61 = vld [vmem:[%s2488_s0 + $0x110] sm:$0xff] }
  0x27   :  { %v80_v62 = vld [vmem:[%s2488_s0 + $0x118] sm:$0xff]  ;;  %v81_v63 = vld [vmem:[%s2488_s0 + $0x120] sm:$0xff]  ;;  %v82_v0 = vld [vmem:[%s2488_s0 + $0x128] sm:$0xff] }
  0x28   :  { %1629 = vmatmul.mubr.msk.f32.gmra.mrb[16].mxu0 %vm118_vm3, %v62_v33  ;;  %v83_v1 = vld [vmem:[%s2488_s0 + $0x130] sm:$0xff]  ;;  %v84_v2 = vld [vmem:[%s2488_s0 + $0x138] sm:$0xff]  ;;  %v906_v3 = vld [vmem:[%s2492_s4] sm:$0xff] }
  0x29   :  { %1631 = vmatprep.mubr.msk.f32.mxu0 %vm118_vm3, %v63_v34  ;;  %1683 = vmatmul.mubr.msk.f32.gmra.mrb[12].mxu1 %vm118_vm3, %v98_v35  ;;  %v2164_v5 = vld [vmem:[%s2491_s3] ss:$0 sm:$0xff]  ;;  %vm2445_vm10 = vmpackc.low %vm1257_vm9, %vm1819_vm1 }
  0x2a   :  { %1685 = vmatprep.mubr.msk.f32.mxu1 %vm118_vm3, %v99_v36  ;;  %1701 = vmatpush3.msra.mxu1 %v906_v3 }
  0x2c   :  { %1632 = vmatmul.mubr.msk.f32.gmra.mrb[18].mxu0 %vm118_vm3, %v64_v37 }
  0x2d   :  { %1634 = vmatprep.mubr.msk.f32.mxu0 %vm118_vm3, %v65_v38  ;;  %1686 = vmatmul.mubr.msk.f32.gmra.mrb[14].mxu1 %vm118_vm3, %v100_v39 }
  0x2e   :  { %1688 = vmatprep.mubr.msk.f32.mxu1 %vm118_vm3, %v101_v40 }
  0x30   :  { %1635 = vmatmul.mubr.msk.f32.gmra.mrb[20].mxu0 %vm118_vm3, %v66_v41 }
  0x31   :  { %1637 = vmatprep.mubr.msk.f32.mxu0 %vm118_vm3, %v67_v42  ;;  %1689 = vmatmul.mubr.msk.f32.gmra.mrb[16].mxu1 %vm118_vm3, %v102_v43 }
  0x32   :  { %1691 = vmatprep.mubr.msk.f32.mxu1 %vm118_vm3, %v103_v44 }
  0x34   :  { %1638 = vmatmul.mubr.msk.f32.gmra.mrb[22].mxu0 %vm118_vm3, %v68_v45 }
  0x35   :  { %1640 = vmatprep.mubr.msk.f32.mxu0 %vm118_vm3, %v69_v46  ;;  %1692 = vmatmul.mubr.msk.f32.gmra.mrb[18].mxu1 %vm118_vm3, %v104_v47 }
  0x36   :  { %1694 = vmatprep.mubr.msk.f32.mxu1 %vm118_vm3, %v105_v48 }
  0x38   :  { %1641 = vmatmul.mubr.msk.f32.gmra.mrb[24].mxu0 %vm118_vm3, %v70_v49 }
  0x39   :  { %1643 = vmatprep.mubr.msk.f32.mxu0 %vm118_vm3, %v71_v50  ;;  %1695 = vmatmul.mubr.msk.f32.gmra.mrb[20].mxu1 %vm118_vm3, %v106_v51 }
  0x3a   :  { %1697 = vmatprep.mubr.msk.f32.mxu1 %vm118_vm3, %v107_v52 }
  0x3c   :  { %1644 = vmatmul.mubr.msk.f32.gmra.mrb[26].mxu0 %vm118_vm3, %v72_v53  ;;  %v994_v53 = vld [vmem:[%s2494_s6] sm:$0xff] }
  0x3d   :  { %1646 = vmatprep.mubr.msk.f32.mxu0 %vm118_vm3, %v73_v54  ;;  %1698 = vmatmul.mubr.msk.f32.gmra.mrb[22].mxu1 %vm118_vm3, %v108_v55  ;;  %v995_v54 = vld [vmem:[%s2494_s6 + $0x8] sm:$0xff] }
  0x3e   :  { %1702 = vmatprep.mubr.msk.f32.mxu1 %vm1821_vm5, %v1820_v4 }
  0x40   :  { %1647 = vmatmul.mubr.msk.f32.gmra.mrb[28].mxu0 %vm118_vm3, %v74_v56 }
  0x41   :  { %1649 = vmatprep.mubr.msk.f32.mxu0 %vm118_vm3, %v75_v57 }
  0x44   :  { %1650 = vmatmul.mubr.msk.f32.gmra.mrb[30].mxu0 %vm118_vm3, %v76_v58 }
  0x45   :  { %1652 = vmatprep.mubr.msk.f32.mxu0 %vm118_vm3, %v77_v59 }
  0x48   :  { %1653 = vmatmul.mubr.msk.f32.gmra.mrb[32].mxu0 %vm118_vm3, %v78_v60 }
  0x49   :  { %1655 = vmatprep.mubr.msk.f32.mxu0 %vm118_vm3, %v79_v61 }
  0x4c   :  { %1656 = vmatmul.mubr.msk.f32.gmra.mrb[34].mxu0 %vm118_vm3, %v80_v62 }
  0x4d   :  { %1658 = vmatprep.mubr.msk.f32.mxu0 %vm118_vm3, %v81_v63 }
  0x50   :  { %1659 = vmatmul.mubr.msk.f32.gmra.mrb[36].mxu0 %vm118_vm3, %v82_v0 }
  0x51   :  { %1661 = vmatprep.mubr.msk.f32.mxu0 %vm118_vm3, %v83_v1  ;;  %v2209_v1 = vpack.c.bf16 %v995_v54, %v994_v53 }
  0x53   :  { %1755 = vmatprep.subr.bf16.mxu1 %v2209_v1 }
  0x54   :  { %1662 = vmatmul.mubr.msk.f32.gmra.mrb[38].mxu0 %vm118_vm3, %v84_v2 }
  0xdb   :  { %v1606_v6 = vpop.f32.mrb[0].mxu0  ;;  %v2175_v26 = vpop.f32.mrb[0].mxu1 }
  0xdc   :  { %v387_v7 = vadd.f32 %v1606_v6, %v2164_v5  ;;  %v381_v8 = vpop.f32.mrb[1].mxu0  ;;  %v2177_v28 = vpop.f32.mrb[1].mxu1 }
  0xdd   :  { %v382_v9 = vadd.f32 %v2164_v5, %v381_v8 }
  0xde   :  { %v701_v10 = vmax.f32 %v387_v7, 0.0 }
  0xdf   :  { %v700_v11 = vmax.f32 %v382_v9, 0.0  ;;  %v1609_v12 = vpop.f32.mrb[2].mxu0  ;;  %v2183_v38 = vpop.f32.mrb[2].mxu1 }
  0xe0   :  { %v766_v13 = vsel %vm764_vm4, %v701_v10, 0.0  ;;  %v397_v14 = vadd.f32 %v1609_v12, %v2164_v5  ;;  %v391_v15 = vpop.f32.mrb[3].mxu0  ;;  %v2185_v40 = vpop.f32.mrb[3].mxu1 }
  0xe1   :  { %v765_v16 = vsel %vm764_vm4, %v700_v11, 0.0  ;;  %v392_v17 = vadd.f32 %v2164_v5, %v391_v15 }
  0xe2   :  { %v767_v18 = vadd.f32 %v766_v13, %v765_v16  ;;  %v703_v19 = vmax.f32 %v397_v14, 0.0 }
  0xe3   :  { %v702_v20 = vmax.f32 %v392_v17, 0.0  ;;  %v1612_v21 = vpop.f32.mrb[4].mxu0 }
  0xe4   :  { %v407_v22 = vadd.f32 %v1612_v21, %v2164_v5  ;;  %v401_v23 = vpop.f32.mrb[5].mxu0  ;;  %v770_v29 = vsel %vm764_vm4, %v703_v19, 0.0 }
  0xe5   :  { %v768_v24 = vsel %vm764_vm4, %v702_v20, 0.0  ;;  %v402_v25 = vadd.f32 %v2164_v5, %v401_v23 }
  0xe6   :  { %v769_v27 = vadd.f32 %v768_v24, %v767_v18  ;;  %v705_v30 = vmax.f32 %v407_v22, 0.0 }
  0xe7   :  { %v704_v31 = vmax.f32 %v402_v25, 0.0  ;;  %v1615_v32 = vpop.f32.mrb[6].mxu0 }
  0xe8   :  { %v771_v33 = vadd.f32 %v770_v29, %v769_v27  ;;  %v417_v34 = vadd.f32 %v1615_v32, %v2164_v5  ;;  %v411_v35 = vpop.f32.mrb[7].mxu0  ;;  %v774_v41 = vsel %vm764_vm4, %v705_v30, 0.0 }
  0xe9   :  { %v772_v36 = vsel %vm764_vm4, %v704_v31, 0.0  ;;  %v412_v37 = vadd.f32 %v2164_v5, %v411_v35 }
  0xea   :  { %v773_v39 = vadd.f32 %v772_v36, %v771_v33  ;;  %v707_v42 = vmax.f32 %v417_v34, 0.0 }
  0xeb   :  { %v706_v43 = vmax.f32 %v412_v37, 0.0  ;;  %v1618_v44 = vpop.f32.mrb[8].mxu0 }
  0xec   :  { %v775_v45 = vadd.f32 %v774_v41, %v773_v39  ;;  %v427_v46 = vadd.f32 %v1618_v44, %v2164_v5  ;;  %v421_v47 = vpop.f32.mrb[9].mxu0  ;;  %v2191_v50 = vpop.f32.mrb[4].mxu1  ;;  %v778_v55 = vsel %vm764_vm4, %v707_v42, 0.0 }
  0xed   :  { %v776_v48 = vsel %vm764_vm4, %v706_v43, 0.0  ;;  %v422_v49 = vadd.f32 %v2164_v5, %v421_v47  ;;  %v2193_v52 = vpop.f32.mrb[5].mxu1 }
  0xee   :  { %v777_v51 = vadd.f32 %v776_v48, %v775_v45  ;;  %v709_v56 = vmax.f32 %v427_v46, 0.0 }
  0xef   :  { %v708_v57 = vmax.f32 %v422_v49, 0.0  ;;  %v1621_v58 = vpop.f32.mrb[10].mxu0 }
  0xf0   :  { %v779_v59 = vadd.f32 %v778_v55, %v777_v51  ;;  %v437_v60 = vadd.f32 %v1621_v58, %v2164_v5  ;;  %v431_v61 = vpop.f32.mrb[11].mxu0  ;;  %v2207_v0 = vpop.f32.mrb[6].mxu1  ;;  %v782_v6 = vsel %vm764_vm4, %v709_v56, 0.0 }
  0xf1   :  { %v780_v62 = vsel %vm764_vm4, %v708_v57, 0.0  ;;  %v432_v63 = vadd.f32 %v2164_v5, %v431_v61  ;;  %v2211_v3 = vpop.f32.mrb[7].mxu1 }
  0xf2   :  { %v781_v2 = vadd.f32 %v780_v62, %v779_v59  ;;  %v711_v7 = vmax.f32 %v437_v60, 0.0 }
  0xf3   :  { %v710_v8 = vmax.f32 %v432_v63, 0.0  ;;  %v1624_v9 = vpop.f32.mrb[12].mxu0 }
  0xf4   :  { %v783_v10 = vadd.f32 %v782_v6, %v781_v2  ;;  %v447_v11 = vadd.f32 %v1624_v9, %v2164_v5  ;;  %v441_v12 = vpop.f32.mrb[13].mxu0  ;;  %v2218_v15 = vpop.f32.mrb[8].mxu1  ;;  %v786_v18 = vsel %vm764_vm4, %v711_v7, 0.0 }
  0xf5   :  { %v784_v13 = vsel %vm764_vm4, %v710_v8, 0.0  ;;  %v442_v14 = vadd.f32 %v2164_v5, %v441_v12  ;;  %v2220_v17 = vpop.f32.mrb[9].mxu1 }
  0xf6   :  { %v785_v16 = vadd.f32 %v784_v13, %v783_v10  ;;  %v713_v19 = vmax.f32 %v447_v11, 0.0 }
  0xf7   :  { %v712_v20 = vmax.f32 %v442_v14, 0.0  ;;  %v1627_v21 = vpop.f32.mrb[14].mxu0 }
  0xf8   :  { %v787_v22 = vadd.f32 %v786_v18, %v785_v16  ;;  %v457_v23 = vadd.f32 %v1627_v21, %v2164_v5  ;;  %v451_v24 = vpop.f32.mrb[15].mxu0  ;;  %v2226_v29 = vpop.f32.mrb[10].mxu1  ;;  %v790_v32 = vsel %vm764_vm4, %v713_v19, 0.0 }
  0xf9   :  { %v788_v25 = vsel %vm764_vm4, %v712_v20, 0.0  ;;  %v452_v27 = vadd.f32 %v2164_v5, %v451_v24  ;;  %v2228_v31 = vpop.f32.mrb[11].mxu1 }
  0xfa   :  { %v789_v30 = vadd.f32 %v788_v25, %v787_v22  ;;  %v715_v33 = vmax.f32 %v457_v23, 0.0 }
  0xfb   :  { %v714_v34 = vmax.f32 %v452_v27, 0.0  ;;  %v1630_v35 = vpop.f32.mrb[16].mxu0 }
  0xfc   :  { %v791_v36 = vadd.f32 %v790_v32, %v789_v30  ;;  %v467_v37 = vadd.f32 %v1630_v35, %v2164_v5  ;;  %v461_v39 = vpop.f32.mrb[17].mxu0  ;;  %v2234_v43 = vpop.f32.mrb[12].mxu1  ;;  %v794_v46 = vsel %vm764_vm4, %v715_v33, 0.0 }
  0xfd   :  { %v792_v41 = vsel %vm764_vm4, %v714_v34, 0.0  ;;  %v462_v42 = vadd.f32 %v2164_v5, %v461_v39  ;;  %v2236_v45 = vpop.f32.mrb[13].mxu1 }
  0xfe   :  { %v793_v44 = vadd.f32 %v792_v41, %v791_v36  ;;  %v717_v47 = vmax.f32 %v467_v37, 0.0 }
  0xff   :  { %v716_v48 = vmax.f32 %v462_v42, 0.0  ;;  %v1633_v49 = vpop.f32.mrb[18].mxu0 }
 0x100   :  { %v795_v51 = vadd.f32 %v794_v46, %v793_v44  ;;  %v477_v53 = vadd.f32 %v1633_v49, %v2164_v5  ;;  %v471_v54 = vpop.f32.mrb[19].mxu0  ;;  %v2242_v57 = vpop.f32.mrb[14].mxu1  ;;  %v798_v60 = vsel %vm764_vm4, %v717_v47, 0.0 }
 0x101   :  { %v796_v55 = vsel %vm764_vm4, %v716_v48, 0.0  ;;  %v472_v56 = vadd.f32 %v2164_v5, %v471_v54  ;;  %v2244_v59 = vpop.f32.mrb[15].mxu1 }
 0x102   :  { %v797_v58 = vadd.f32 %v796_v55, %v795_v51  ;;  %v719_v61 = vmax.f32 %v477_v53, 0.0 }
 0x103   :  { %v718_v62 = vmax.f32 %v472_v56, 0.0  ;;  %v1636_v63 = vpop.f32.mrb[20].mxu0 }
 0x104   :  { %v799_v2 = vadd.f32 %v798_v60, %v797_v58  ;;  %v487_v6 = vadd.f32 %v1636_v63, %v2164_v5  ;;  %v481_v7 = vpop.f32.mrb[21].mxu0  ;;  %v2250_v10 = vpop.f32.mrb[16].mxu1  ;;  %v802_v13 = vsel %vm764_vm4, %v719_v61, 0.0 }
 0x105   :  { %v800_v8 = vsel %vm764_vm4, %v718_v62, 0.0  ;;  %v482_v9 = vadd.f32 %v2164_v5, %v481_v7  ;;  %v2252_v12 = vpop.f32.mrb[17].mxu1 }
 0x106   :  { %v801_v11 = vadd.f32 %v800_v8, %v799_v2  ;;  %v721_v14 = vmax.f32 %v487_v6, 0.0 }
 0x107   :  { %v720_v16 = vmax.f32 %v482_v9, 0.0  ;;  %v1639_v18 = vpop.f32.mrb[22].mxu0 }
 0x108   :  { %v803_v19 = vadd.f32 %v802_v13, %v801_v11  ;;  %v497_v20 = vadd.f32 %v1639_v18, %v2164_v5  ;;  %v491_v21 = vpop.f32.mrb[23].mxu0  ;;  %v2258_v24 = vpop.f32.mrb[18].mxu1  ;;  %v806_v30 = vsel %vm764_vm4, %v721_v14, 0.0 }
 0x109   :  { %v804_v22 = vsel %vm764_vm4, %v720_v16, 0.0  ;;  %v492_v23 = vadd.f32 %v2164_v5, %v491_v21  ;;  %v2260_v27 = vpop.f32.mrb[19].mxu1 }
 0x10a   :  { %v805_v25 = vadd.f32 %v804_v22, %v803_v19  ;;  %v723_v32 = vmax.f32 %v497_v20, 0.0 }
 0x10b   :  { %v722_v33 = vmax.f32 %v492_v23, 0.0  ;;  %v1642_v34 = vpop.f32.mrb[24].mxu0 }
 0x10c   :  { %v807_v35 = vadd.f32 %v806_v30, %v805_v25  ;;  %v507_v36 = vadd.f32 %v1642_v34, %v2164_v5  ;;  %v501_v37 = vpop.f32.mrb[25].mxu0  ;;  %v2266_v42 = vpop.f32.mrb[20].mxu1  ;;  %v810_v47 = vsel %vm764_vm4, %v723_v32, 0.0 }
 0x10d   :  { %v808_v39 = vsel %vm764_vm4, %v722_v33, 0.0  ;;  %v502_v41 = vadd.f32 %v2164_v5, %v501_v37  ;;  %v2268_v46 = vpop.f32.mrb[21].mxu1 }
 0x10e   :  { %v809_v44 = vadd.f32 %v808_v39, %v807_v35  ;;  %v725_v48 = vmax.f32 %v507_v36, 0.0 }
 0x10f   :  { %v724_v49 = vmax.f32 %v502_v41, 0.0  ;;  %v1645_v51 = vpop.f32.mrb[26].mxu0 }
 0x110   :  { %v811_v53 = vadd.f32 %v810_v47, %v809_v44  ;;  %v517_v54 = vadd.f32 %v1645_v51, %v2164_v5  ;;  %v511_v55 = vpop.f32.mrb[27].mxu0  ;;  %v2274_v60 = vpop.f32.mrb[22].mxu1  ;;  %v814_v63 = vsel %vm764_vm4, %v725_v48, 0.0 }
 0x111   :  { %v812_v56 = vsel %vm764_vm4, %v724_v49, 0.0  ;;  %v512_v58 = vadd.f32 %v2164_v5, %v511_v55  ;;  %v2276_v62 = vpop.f32.mrb[23].mxu1 }
 0x112   :  { %v813_v61 = vadd.f32 %v812_v56, %v811_v53  ;;  %v727_v2 = vmax.f32 %v517_v54, 0.0 }
 0x113   :  { %v726_v6 = vmax.f32 %v512_v58, 0.0  ;;  %v1648_v7 = vpop.f32.mrb[28].mxu0 }
 0x114   :  { %v815_v8 = vadd.f32 %v814_v63, %v813_v61  ;;  %v527_v9 = vadd.f32 %v1648_v7, %v2164_v5  ;;  %v521_v11 = vpop.f32.mrb[29].mxu0  ;;  %v818_v18 = vsel %vm764_vm4, %v727_v2, 0.0 }
 0x115   :  { %v816_v13 = vsel %vm764_vm4, %v726_v6, 0.0  ;;  %v522_v14 = vadd.f32 %v2164_v5, %v521_v11 }
 0x116   :  { %v817_v16 = vadd.f32 %v816_v13, %v815_v8  ;;  %v729_v19 = vmax.f32 %v527_v9, 0.0 }
 0x117   :  { %v728_v20 = vmax.f32 %v522_v14, 0.0  ;;  %v1651_v21 = vpop.f32.mrb[30].mxu0 }
 0x118   :  { %v819_v22 = vadd.f32 %v818_v18, %v817_v16  ;;  %v537_v23 = vadd.f32 %v1651_v21, %v2164_v5  ;;  %v531_v25 = vpop.f32.mrb[31].mxu0  ;;  %v822_v34 = vsel %vm764_vm4, %v729_v19, 0.0 }
 0x119   :  { %v820_v30 = vsel %vm764_vm4, %v728_v20, 0.0  ;;  %v532_v32 = vadd.f32 %v2164_v5, %v531_v25  ;;  %v582_v20 = vadd.f32 %v2164_v5, %v2177_v28 }
 0x11a   :  { %v821_v33 = vadd.f32 %v820_v30, %v819_v22  ;;  %v731_v35 = vmax.f32 %v537_v23, 0.0 }
 0x11b   :  { %v730_v36 = vmax.f32 %v532_v32, 0.0  ;;  %v1654_v37 = vpop.f32.mrb[32].mxu0 }
 0x11c   :  { %v823_v39 = vadd.f32 %v822_v34, %v821_v33  ;;  %v547_v41 = vadd.f32 %v1654_v37, %v2164_v5  ;;  %v541_v44 = vpop.f32.mrb[33].mxu0  ;;  %v826_v53 = vsel %vm764_vm4, %v731_v35, 0.0  ;;  %v587_v37 = vadd.f32 %v2175_v26, %v2164_v5 }
 0x11d   :  { %v824_v47 = vsel %vm764_vm4, %v730_v36, 0.0  ;;  %v542_v48 = vadd.f32 %v2164_v5, %v541_v44 }
 0x11e   :  { %v825_v49 = vadd.f32 %v824_v47, %v823_v39  ;;  %v733_v51 = vmax.f32 %v547_v41, 0.0  ;;  %v740_v39 = vmax.f32 %v582_v20, 0.0  ;;  %v592_v47 = vadd.f32 %v2164_v5, %v2185_v40 }
 0x11f   :  { %v732_v54 = vmax.f32 %v542_v48, 0.0  ;;  %v1657_v55 = vpop.f32.mrb[34].mxu0 }
 0x120   :  { %v2291_v56 = vadd.f32 %v826_v53, %v825_v49  ;;  %v835_v58 = vsel %vm764_vm4, %v733_v51, 0.0  ;;  %v557_v61 = vadd.f32 %v1657_v55, %v2164_v5  ;;  %v551_v63 = vpop.f32.mrb[35].mxu0  ;;  %v741_v53 = vmax.f32 %v587_v37, 0.0 }
 0x121   :  { %v834_v2 = vsel %vm764_vm4, %v732_v54, 0.0  ;;  %v552_v6 = vadd.f32 %v2164_v5, %v551_v63  ;;  %v597_v54 = vadd.f32 %v2183_v38, %v2164_v5  ;;  %v849_v26 = vsel %vm764_vm4, %v740_v39, 0.0 }
 0x122   :  { %v836_v7 = vadd.f32 %v835_v58, %v834_v2  ;;  %v735_v8 = vmax.f32 %v557_v61, 0.0  ;;  %v742_v58 = vmax.f32 %v592_v47, 0.0  ;;  %v602_v61 = vadd.f32 %v2164_v5, %v2193_v52 }
 0x123   :  { %v734_v9 = vmax.f32 %v552_v6, 0.0  ;;  %v1660_v11 = vpop.f32.mrb[36].mxu0  ;;  %v851_v2 = vsel %vm764_vm4, %v741_v53, 0.0  ;;  %v607_v6 = vadd.f32 %v2191_v50, %v2164_v5  ;;  %v612_v38 = vadd.f32 %v2164_v5, %v2211_v3 }
 0x124   :  { %v567_v13 = vadd.f32 %v1660_v11, %v2164_v5  ;;  %v561_v14 = vpop.f32.mrb[37].mxu0  ;;  %v839_v21 = vsel %vm764_vm4, %v735_v8, 0.0  ;;  %v853_v8 = vsel %vm764_vm4, %v742_v58, 0.0  ;;  %v617_v52 = vadd.f32 %v2207_v0, %v2164_v5 }
 0x125   :  { %v837_v16 = vsel %vm764_vm4, %v734_v9, 0.0  ;;  %v562_v18 = vadd.f32 %v2164_v5, %v561_v14  ;;  %v744_v9 = vmax.f32 %v602_v61, 0.0  ;;  %v745_v14 = vmax.f32 %v607_v6, 0.0 }
 0x126   :  { %v838_v19 = vadd.f32 %v837_v16, %v836_v7  ;;  %v737_v22 = vmax.f32 %v567_v13, 0.0  ;;  %v743_v7 = vmax.f32 %v597_v54, 0.0  ;;  %v622_v50 = vadd.f32 %v2164_v5, %v2220_v17 }
 0x127   :  { %v736_v23 = vmax.f32 %v562_v18, 0.0  ;;  %v1663_v25 = vpop.f32.mrb[38].mxu0  ;;  %v857_v18 = vsel %vm764_vm4, %v744_v9, 0.0  ;;  %v632_v0 = vadd.f32 %v2164_v5, %v2228_v31  ;;  %v637_v17 = vadd.f32 %v2226_v29, %v2164_v5 }
 0x128   :  { %v840_v30 = vadd.f32 %v839_v21, %v838_v19  ;;  %v577_v32 = vadd.f32 %v1663_v25, %v2164_v5  ;;  %v571_v33 = vpop.f32.mrb[39].mxu0  ;;  %v843_v28 = vsel %vm764_vm4, %v737_v22, 0.0  ;;  %v855_v16 = vsel %vm764_vm4, %v743_v7, 0.0 }
 0x129   :  { %v841_v34 = vsel %vm764_vm4, %v736_v23, 0.0  ;;  %v572_v35 = vadd.f32 %v2164_v5, %v571_v33  ;;  %v746_v19 = vmax.f32 %v612_v38, 0.0  ;;  %v859_v21 = vsel %vm764_vm4, %v745_v14, 0.0 }
 0x12a   :  { %v842_v36 = vadd.f32 %v841_v34, %v840_v30  ;;  %v739_v41 = vmax.f32 %v577_v32, 0.0  ;;  %v747_v23 = vmax.f32 %v617_v52, 0.0  ;;  %v627_v25 = vadd.f32 %v2218_v15, %v2164_v5 }
 0x12b   :  { %v738_v44 = vmax.f32 %v572_v35, 0.0  ;;  %v861_v3 = vsel %vm764_vm4, %v746_v19, 0.0  ;;  %v748_v30 = vmax.f32 %v622_v50, 0.0  ;;  %v750_v37 = vmax.f32 %v632_v0, 0.0 }
 0x12c   :  { %v844_v48 = vadd.f32 %v843_v28, %v842_v36  ;;  %v847_v55 = vsel %vm764_vm4, %v739_v41, 0.0  ;;  %v863_v33 = vsel %vm764_vm4, %v747_v23, 0.0  ;;  %v749_v35 = vmax.f32 %v627_v25, 0.0 }
 0x12d   :  { %v845_v49 = vsel %vm764_vm4, %v738_v44, 0.0  ;;  %v865_v36 = vsel %vm764_vm4, %v748_v30, 0.0  ;;  %v642_v39 = vadd.f32 %v2164_v5, %v2236_v45  ;;  %v751_v41 = vmax.f32 %v637_v17, 0.0 }
 0x12e   :  { %v846_v51 = vadd.f32 %v845_v49, %v844_v48  ;;  %v647_v31 = vadd.f32 %v2234_v43, %v2164_v5  ;;  %v867_v44 = vsel %vm764_vm4, %v749_v35, 0.0  ;;  %v869_v47 = vsel %vm764_vm4, %v750_v37, 0.0 }
 0x12f   :  { %v752_v48 = vmax.f32 %v642_v39, 0.0  ;;  %v652_v29 = vadd.f32 %v2164_v5, %v2244_v59  ;;  %v662_v43 = vadd.f32 %v2164_v5, %v2252_v12  ;;  %v667_v59 = vadd.f32 %v2250_v10, %v2164_v5 }
 0x130   :  { %v848_v63 = vadd.f32 %v847_v55, %v846_v51  ;;  %v871_v51 = vsel %vm764_vm4, %v751_v41, 0.0  ;;  %v753_v54 = vmax.f32 %v647_v31, 0.0  ;;  %v657_v55 = vadd.f32 %v2242_v57, %v2164_v5 }
 0x131   :  { %v873_v45 = vsel %vm764_vm4, %v752_v48, 0.0  ;;  %v756_v6 = vmax.f32 %v662_v43, 0.0  ;;  %v672_v7 = vadd.f32 %v2164_v5, %v2260_v27  ;;  %v757_v9 = vmax.f32 %v667_v59, 0.0  ;;  %v996_v48 = vld [vmem:[%s2494_s6 + $0x10] sm:$0xff]  ;;  %v1164_v59 = vld [vmem:[%s2496_s8 + $0x8] sm:$0xff] }
 0x132   :  { %v850_v40 = vadd.f32 %v849_v26, %v848_v63  ;;  %v754_v26 = vmax.f32 %v652_v29, 0.0  ;;  %v875_v61 = vsel %vm764_vm4, %v753_v54, 0.0  ;;  %v677_v12 = vadd.f32 %v2258_v24, %v2164_v5  ;;  %v997_v29 = vld [vmem:[%s2494_s6 + $0x18] sm:$0xff]  ;;  %v990_v54 = vld [vmem:[%s2489_s1] sm:$0xff] }
 0x133   :  { %v682_v10 = vadd.f32 %v2164_v5, %v2268_v46  ;;  %v883_v52 = vsel %vm764_vm4, %v757_v9, 0.0  ;;  %v687_v19 = vadd.f32 %v2266_v42, %v2164_v5  ;;  %v692_v24 = vadd.f32 %v2164_v5, %v2276_v62 }
 0x134   :  { %v852_v11 = vadd.f32 %v851_v2, %v850_v40  ;;  %v755_v2 = vmax.f32 %v657_v55, 0.0  ;;  %v877_v40 = vsel %vm764_vm4, %v754_v26, 0.0  ;;  %v697_v25 = vadd.f32 %v2274_v60, %v2164_v5  ;;  %v998_v55 = vld [vmem:[%s2494_s6 + $0x20] sm:$0xff]  ;;  %v999_v26 = vld [vmem:[%s2494_s6 + $0x28] sm:$0xff] }
 0x135   :  { %v760_v50 = vmax.f32 %v682_v10, 0.0  ;;  %v761_v23 = vmax.f32 %v687_v19, 0.0  ;;  %v762_v30 = vmax.f32 %v692_v24, 0.0  ;;  %v1762_v43 = vpack.c.bf16 %v999_v26, %v998_v55 }
 0x136   :  { %v854_v13 = vadd.f32 %v853_v8, %v852_v11  ;;  %v879_v38 = vsel %vm764_vm4, %v755_v2, 0.0  ;;  %v881_v11 = vsel %vm764_vm4, %v756_v6, 0.0  ;;  %v763_v62 = vmax.f32 %v697_v25, 0.0  ;;  %v1165_v2 = vld [vmem:[%s2496_s8 + $0x10] sm:$0xff] }
 0x138   :  { %v856_v20 = vadd.f32 %v855_v16, %v854_v13  ;;  %v758_v13 = vmax.f32 %v672_v7, 0.0  ;;  %v895_v37 = vsel %vm764_vm4, %v763_v62, 0.0  ;;  %v1166_v7 = vld [vmem:[%s2496_s8 + $0x18] sm:$0xff] }
 0x13a   :  { %v858_v22 = vadd.f32 %v857_v18, %v856_v20  ;;  %v759_v18 = vmax.f32 %v677_v12, 0.0  ;;  %v885_v27 = vsel %vm764_vm4, %v758_v13, 0.0  ;;  %v1499_v12 = vld [vmem:[%s2495_s7] ss:$0 sm:$0xff] }
 0x13c   :  { %v860_v32 = vadd.f32 %v859_v21, %v858_v22  ;;  %v828_v21 = vrot.slane %v2291_v56, 4  ;;  %v887_v22 = vsel %vm764_vm4, %v759_v18, 0.0 }
 0x13e   :  { %v862_v34 = vadd.f32 %v861_v3, %v860_v32  ;;  %v889_v3 = vsel %vm764_vm4, %v760_v50, 0.0  ;;  %v829_v42 = vadd.f32 %v828_v21, %v2291_v56 }
 0x140   :  { %v864_v28 = vadd.f32 %v863_v33, %v862_v34  ;;  %v891_v33 = vsel %vm764_vm4, %v761_v23, 0.0  ;;  %v893_v34 = vsel %vm764_vm4, %v762_v30, 0.0  ;;  %v830_v35 = vrot.slane %v829_v42, 2 }
 0x142   :  { %v866_v15 = vadd.f32 %v865_v36, %v864_v28  ;;  %v831_v28 = vadd.f32 %v830_v35, %v829_v42 }
 0x144   :  { %v868_v49 = vadd.f32 %v867_v44, %v866_v15  ;;  %v832_v5 = vrot.slane %v831_v28, 1 }
 0x146   :  { %v870_v53 = vadd.f32 %v869_v47, %v868_v49  ;;  %v833_v44 = vadd.f32 %v832_v5, %v831_v28 }
 0x148   :  { %v872_v58 = vadd.f32 %v871_v51, %v870_v53  ;;  %v904_v49 = vmul.f32 0.00390625, %v833_v44  ;;  %v1758_v53 = vpack.c.bf16 %v997_v29, %v996_v48 }
 0x14a   :  { %v874_v63 = vadd.f32 %v873_v45, %v872_v58  ;;  %v991_v58 = vld [vmem:[%s2489_s1 + $0x8] sm:$0xff] }
 0x14c   :  { %v876_v8 = vadd.f32 %v875_v61, %v874_v63  ;;  %v992_v61 = vld [vmem:[%s2489_s1 + $0x10] sm:$0xff]  ;;  %v1163_v63 = vld [vmem:[%s2496_s8] sm:$0xff] }
 0x14d   :  { %v1767_v6 = vpack.c.bf16 %v1164_v59, %v1163_v63 }
 0x14e   :  { %v878_v57 = vadd.f32 %v877_v40, %v876_v8  ;;  %v1822_v40 = vmov 0.0|0.0   ;;  %v1770_v8 = vpack.c.bf16 %v1166_v7, %v1165_v2 }
 0x150   :  { %v880_v14 = vadd.f32 %v879_v38, %v878_v57 }
 0x152   :  { %v882_v16 = vadd.f32 %v881_v11, %v880_v14 }
 0x154   :  { %v884_v20 = vadd.f32 %v883_v52, %v882_v16 }
 0x156   :  { %v886_v46 = vadd.f32 %v885_v27, %v884_v20 }
 0x158   :  { %v888_v0 = vadd.f32 %v887_v22, %v886_v46 }
 0x15a   :  { %v890_v32 = vadd.f32 %v889_v3, %v888_v0 }
 0x15c   :  { %v892_v17 = vadd.f32 %v891_v33, %v890_v32 }
 0x15e   :  { %v894_v36 = vadd.f32 %v893_v34, %v892_v17 }
 0x160   :  { %v896_v39 = vadd.f32 %v895_v37, %v894_v36 }
 0x162   :  { %v897_v15 = vrot.slane %v896_v39, 4 }
 0x164   :  { %v898_v41 = vadd.f32 %v897_v15, %v896_v39 }
 0x166   :  { %v899_v60 = vrot.slane %v898_v41, 2 }
 0x168   :  { %v900_v31 = vadd.f32 %v899_v60, %v898_v41 }
 0x16a   :  { %v901_v56 = vrot.slane %v900_v31, 1 }
 0x16c   :  { %v902_v47 = vadd.f32 %v901_v56, %v900_v31 }
 0x16e   :  { %v905_v51 = vmul.f32 0.00390625, %v902_v47 }
 0x170   :  { %v917_v45 = vsel %vm916_vm6, %v905_v51, %v904_v49 }
 0x171   :  { %1703 = vmatmul.mubr.msk.f32.vlgmr.msra.gmra.mrb[24].mxu1 %vm764_vm4, %v917_v45 }
 0x172   :  { %1757 = vmatpush3.bf16.msra.mxu1 %v2209_v1  ;;  %1717 = vmatprep.mubr.msk.f32.mxu1 %vm1007_vm7, %v990_v54  ;;  %v993_v1 = vld [vmem:[%s2489_s1 + $0x18] sm:$0xff] }
 0x173   :  { %1759 = vmatprep.subr.bf16.mxu1 %v1758_v53 }
 0x176   :  { %1761 = vmatpush3.bf16.msra.mxu1 %v1758_v53 }
 0x177   :  { %1763 = vmatprep.subr.bf16.mxu1 %v1762_v43 }
 0x17a   :  { %1765 = vmatpush3.bf16.msra.mxu1 %v1762_v43 }
 0x17b   :  { %1766 = vmatprep.subr.bf16.mxu1 %v1822_v40 }
 0x17d   :  { %1718 = vmatmul.mubr.msk.f32.vlgmr.msra.gmra.mrb[26].mxu1 %vm1007_vm7, %v991_v58 }
 0x17e   :  { %1720 = vmatprep.mubr.msk.f32.mxu1 %vm1007_vm7, %v992_v61  ;;  %1768 = vmatpush3.bf16.msra.mxu1 %v1767_v6 }
 0x17f   :  { %1769 = vmatprep.subr.bf16.mxu1 %v1822_v40 }
 0x181   :  { %1721 = vmatmul.mubr.msk.f32.gmra.mrb[28].mxu1 %vm1007_vm7, %v993_v1 }
 0x182   :  { %1731 = vmatprep.mubr.msk.f32.mxu1 %vm1821_vm5, %v1820_v4  ;;  %1771 = vmatpush3.bf16.msra.mxu1 %v1770_v8 }
 0x183   :  { %1772 = vmatprep.subr.bf16.mxu1 %v1822_v40 }
 0x244   :  { %v2429_v57 = vpop.f32.mrb[24].mxu1 }
 0x245   :  { %v1704_v9 = vpop.f32.mrb[25].mxu1 }
 0x250   :  { %v1719_v38 = vpop.f32.mrb[26].mxu1 }
 0x251   :  { %v1092_v11 = vadd.f32 %v1719_v38, %v1499_v12  ;;  %v1086_v13 = vpop.f32.mrb[27].mxu1  ;;  %v1251_v38 = vld [vmem:[%s2499_s11] sm:$0xff] }
 0x252   :  { %v1087_v10 = vadd.f32 %v1499_v12, %v1086_v13 }
 0x253   :  { %v1106_v14 = vmul.f32 %v1092_v11, %v1092_v11 }
 0x254   :  { %v1105_v52 = vmul.f32 %v1087_v10, %v1087_v10  ;;  %v1722_v16 = vpop.f32.mrb[28].mxu1 }
 0x255   :  { %v1110_v18 = vmul.f32 %v1106_v14, %v1092_v11  ;;  %v1102_v27 = vadd.f32 %v1722_v16, %v1499_v12  ;;  %v1096_v19 = vpop.f32.mrb[29].mxu1 }
 0x256   :  { %v1109_v50 = vmul.f32 %v1105_v52, %v1087_v10  ;;  %v1097_v24 = vadd.f32 %v1499_v12, %v1096_v19  ;;  %v1250_v19 = vld [vmem:[%s2498_s10 + $0x8] sm:$0x3] }
 0x257   :  { %v1114_v20 = vmul.f32 0.044715, %v1110_v18  ;;  %v1108_v21 = vmul.f32 %v1102_v27, %v1102_v27 }
 0x258   :  { %v1113_v22 = vmul.f32 0.044715, %v1109_v50  ;;  %v1107_v46 = vmul.f32 %v1097_v24, %v1097_v24  ;;  %v1504_v50 = vld [vmem:[%s2497_s9] ss:$0 sm:$0xff] }
 0x259   :  { %v1118_v23 = vadd.f32 %v1114_v20, %v1092_v11  ;;  %v1112_v3 = vmul.f32 %v1108_v21, %v1102_v27 }
 0x25a   :  { %v1117_v25 = vadd.f32 %v1113_v22, %v1087_v10  ;;  %v1111_v30 = vmul.f32 %v1107_v46, %v1097_v24 }
 0x25b   :  { %v1122_v0 = vmul.f32 0.7978846, %v1118_v23  ;;  %v1116_v42 = vmul.f32 0.044715, %v1112_v3 }
 0x25c   :  { %v1121_v32 = vmul.f32 0.7978846, %v1117_v25  ;;  %v1115_v33 = vmul.f32 0.044715, %v1111_v30  ;;  %v1510_v30 = vld [vmem:[%s2500_s12] ss:$0 sm:$0xff] }
 0x25d   :  { %1787 = vtanh.f32 %v1122_v0  ;;  %v1120_v62 = vadd.f32 %v1116_v42, %v1102_v27 }
 0x25e   :  { %1789 = vtanh.f32 %v1121_v32  ;;  %v1119_v34 = vadd.f32 %v1115_v33, %v1097_v24 }
 0x25f   :  { %v1124_v17 = vmul.f32 0.7978846, %v1120_v62 }
 0x260   :  { %v1123_v35 = vmul.f32 0.7978846, %v1119_v34 }
 0x261   :  { %1791 = vtanh.f32 %v1124_v17 }
 0x262   :  { %1793 = vtanh.f32 %v1123_v35 }
 0x267   :  { %v1788_v36 = vpop.eup %1787 }
 0x268   :  { %v1790_v37 = vpop.eup %1789  ;;  %v1130_v39 = vadd.f32 1.0, %v1788_v36 }
 0x269   :  { %v1129_v28 = vadd.f32 1.0, %v1790_v37 }
 0x26a   :  { %v1134_v15 = vmul.f32 0.5, %v1130_v39 }
 0x26b   :  { %v1792_v41 = vpop.eup %1791  ;;  %v1133_v5 = vmul.f32 0.5, %v1129_v28 }
 0x26c   :  { %v1794_v60 = vpop.eup %1793  ;;  %v1138_v31 = vmul.f32 %v1134_v15, %v1092_v11  ;;  %v1132_v44 = vadd.f32 1.0, %v1792_v41  ;;  %v1252_v11 = vld [vmem:[%s2499_s11 + $0x8] sm:$0x3] }
 0x26d   :  { %v1137_v56 = vmul.f32 %v1133_v5, %v1087_v10  ;;  %v1131_v47 = vadd.f32 1.0, %v1794_v60  ;;  %v1773_v52 = vpack.c.bf16 %v1252_v11, %v1251_v38 }
 0x26e   :  { %v1136_v48 = vmul.f32 0.5, %v1132_v44  ;;  %v1143_v29 = vsel %vm1141_vm8, %v1138_v31, 0.0 }
 0x26f   :  { %v1135_v49 = vmul.f32 0.5, %v1131_v47  ;;  %v1142_v51 = vsel %vm1141_vm8, %v1137_v56, 0.0 }
 0x270   :  { %v1140_v53 = vmul.f32 %v1136_v48, %v1102_v27  ;;  %v1144_v54 = vadd.f32 %v1143_v29, %v1142_v51  ;;  %v1249_v27 = vld [vmem:[%s2498_s10] sm:$0xff] }
 0x271   :  { %v1139_v45 = vmul.f32 %v1135_v49, %v1097_v24  ;;  %v1777_v20 = vpack.c.bf16 %v1250_v19, %v1249_v27 }
 0x272   :  { %v1145_v55 = vrot.slane %v1144_v54, 4  ;;  %v1152_v26 = vsel %vm1141_vm8, %v1140_v53, 0.0 }
 0x273   :  { %v1151_v43 = vsel %vm1141_vm8, %v1139_v45, 0.0 }
 0x274   :  { %v1146_v58 = vadd.f32 %v1145_v55, %v1144_v54  ;;  %v1153_v61 = vadd.f32 %v1152_v26, %v1151_v43 }
 0x276   :  { %v1147_v1 = vrot.slane %v1146_v58, 2  ;;  %v1154_v63 = vrot.slane %v1153_v61, 4 }
 0x278   :  { %v1148_v59 = vadd.f32 %v1147_v1, %v1146_v58  ;;  %v1155_v2 = vadd.f32 %v1154_v63, %v1153_v61 }
 0x27a   :  { %v1149_v6 = vrot.slane %v1148_v59, 1  ;;  %v1156_v7 = vrot.slane %v1155_v2, 2 }
 0x27c   :  { %v1157_v8 = vadd.f32 %v1156_v7, %v1155_v2  ;;  %v1150_v9 = vadd.f32 %v1149_v6, %v1148_v59 }
 0x27e   :  { %v1158_v12 = vrot.slane %v1157_v8, 1  ;;  %v1161_v10 = vmul.f32 0.0625, %v1150_v9 }
 0x280   :  { %v1159_v13 = vadd.f32 %v1158_v12, %v1157_v8 }
 0x282   :  { %v1162_v14 = vmul.f32 0.0625, %v1159_v13 }
 0x284   :  { %v1176_v18 = vsel %vm916_vm6, %v1162_v14, %v1161_v10 }
 0x285   :  { %1732 = vmatmul.mubr.msk.f32.vlgmr.msra.gmra.mrb[30].mxu1 %vm1141_vm8, %v1176_v18 }
 0x286   :  { %1775 = vmatpush3.bf16.msk.msra.mxu1 %vm2445_vm10, %v1773_v52  ;;  %1738 = vmatprep.mubr.msk.f32.mxu1 %vm1821_vm5, %v1820_v4 }
 0x287   :  { %1776 = vmatprep.subr.bf16.mxu1 %v1822_v40  ;;  %v1497_v40 = vld [vmem:[%s2493_s5] ss:$0 sm:$0xff]  ;;  %s1795_s5 = scalar_lea.vmem %s1424_s14, 32 }
 0x288   :  { %v987_v46 = vadd.f32 %v1497_v40, %v2429_v57  ;;  %p1796_p0 = scmp.ne.s32.totalorder %s1424_s14, %s1795_s5  ;;  %p1801_p2 = scmp.lt.s32.totalorder %s1795_s5, %s1795_s5 }
 0x28a   :  { %p1802_p3 = por %p1801_p2, %p1800_p1 }
 0x28c   :  { %p1803_p4 = pnand %p1802_p3, %p1796_p0 }
 0x358   :  { %v1245_v24 = vpop.f32.mrb[30].mxu1 }
 0x359   :  { %v1246_v21 = vadd.f32 %v1504_v50, %v1245_v24  ;;  %v1733_v22 = vpop.f32.mrb[31].mxu1 }
 0x35b   :  { %1739 = vmatmul.mubr.msk.f32.vlgmr.msra.gmra.mrb[32].mxu1 %vm1253_vm11, %v1246_v21 }
 0x35c   :  { %1779 = vmatpush3.bf16.msk.msra.mxu1 %vm2445_vm10, %v1777_v20  ;;  %1745 = vmatprep.mubr.msk.f32.mxu1 %vm1821_vm5, %v1820_v4 }
 0x35f   :  { %1746 = vmatmul.mubr.msk.f32.vlgmr.msra.gmra.mrb[34].mxu1 %vm1253_vm11, %v987_v46 }
 0x42e   :  { %v1327_v23 = vpop.f32.mrb[32].mxu1 }
 0x42f   :  { %v1740_v3 = vpop.f32.mrb[33].mxu1 }
 0x432   :  { %v1403_v25 = vpop.f32.mrb[34].mxu1 }
 0x433   :  { %v1404_v0 = vadd.f32 %v1403_v25, %v1327_v23  ;;  %v1747_v42 = vpop.f32.mrb[35].mxu1 }
 0x435   :  { %v1414_v32 = vadd.f32 %v1510_v30, %v1404_v0 }
 0x437   :  { %1416 = vst.msk [vmem:[#allocation2] sm:$0x3] %vm1415_vm12, %v1414_v32 }
 0x438   :  { %1806 = shalt.err (!%p1803_p4)
}
 0x439   :  { %s1807_s2 = scalar_lea.hbm %s2501_s13, 32 }
 0x43a   :  { %p1808_p5 = scmp.ne.s32.totalorder %s2501_s13, %s1807_s2  ;;  %p1811_p6 = scmp.lt.u32.totalorder %s1807_s2, %s2501_s13 }
 0x43c   :  { %p1813_p7 = pnand %p1811_p6, %p1808_p5 }
 0x43e   :  { %1816 = shalt.err (!%p1813_p7)
}
 0x43f   :  { %1426 = dma.vmem_to_hbm [thread:$0]  %s1424_s14, 32, %s2501_s13, [#allocation3]  }
 0x440   :  { %1817 = dma.done.wait [#allocation3], 32  }
 0x441   :  { %1818 = vsyncadd [#allocation3], 4294967264 }
 0x442   :  { %1430 = vsyncpa [#allocation3], 1 }

</bundles_post_ra>
